<compile_context>
chip_gen: v6e
topology: v6e:2x2x1
jax: 0.10.0
libtpu: 0.0.40
codegen_flags: <defaults>
</compile_context>

<pallas_src>
import math

import jax
import jax.numpy as jnp
from jax import lax
from jax.experimental import pallas as pl
from jax.experimental.pallas import tpu as pltpu


def _message_norm_rowwise_kernel(scale_ref, feats_ref, msg_ref, out_ref):
    """Unpacked path: one logical row per physical row (D already lane-dense
    or not packable).  Per-row XLU reductions, per-row (tile, 1) factor."""
    msg = msg_ref[...].astype(jnp.float32)
    feats = feats_ref[...].astype(jnp.float32)
    scale = scale_ref[0]  # scalar parameter, lives in SMEM

    msg_ss = jnp.sum(msg * msg, axis=-1, keepdims=True)
    feats_ss = jnp.sum(feats * feats, axis=-1, keepdims=True)
    # rsqrt(max(sumsq, 1e-24)) == 1 / max(sqrt(sumsq), 1e-12) in f32.
    # scale is folded into the (tile, 1) factor -> no extra full-tile multiply.
    factor = (jnp.sqrt(feats_ss) * scale) * lax.rsqrt(jnp.maximum(msg_ss, 1e-24))
    out_ref[...] = (msg * factor).astype(out_ref.dtype)


def _message_norm_packed_kernel(scale_ref, seg_ref, feats_ref, msg_ref, out_ref):
    """Packed path: each physical row holds `pack` logical rows of D features.
    The segmented sum-of-squares + broadcast-back is one MXU matmul per input
    against a constant block-diagonal 0/1 matrix (rows stay independent)."""
    msg = msg_ref[...].astype(jnp.float32)
    feats = feats_ref[...].astype(jnp.float32)
    scale = scale_ref[0]
    seg = seg_ref[...]  # (d_p, d_p) block-diagonal 0/1, f32

    # (tile, d_p) @ (d_p, d_p): per-segment sum broadcast to every lane of the
    # segment.  HIGHEST precision -> f32 passes on the MXU (exact with a 0/1
    # matrix); the MXU is otherwise idle in this kernel.
    msg_b = jnp.dot(msg * msg, seg,
                    preferred_element_type=jnp.float32,
                    precision=jax.lax.Precision.HIGHEST)
    feats_b = jnp.dot(feats * feats, seg,
                      preferred_element_type=jnp.float32,
                      precision=jax.lax.Precision.HIGHEST)

    factor = jnp.sqrt(feats_b) * lax.rsqrt(jnp.maximum(msg_b, 1e-24))
    # factor is full-tile here; one extra full-tile multiply for `scale` keeps
    # sign-correctness for a learned (possibly negative) scale and is noise
    # next to the HBM traffic.
    out_ref[...] = (msg * (factor * scale)).astype(out_ref.dtype)


def message_norm(feats, msg, scale, *, vmem_budget_bytes=12 * 1024 * 1024):
    """feats, msg: [N, D]; scale: [1] float32.  Returns [N, D] in msg.dtype."""
    N, D = feats.shape
    assert msg.shape == (N, D)
    assert scale.shape == (1,)
    out_dtype = msg.dtype
    itemsize = jnp.dtype(out_dtype).itemsize

    # ---- lane-dense row packing -------------------------------------------
    # Pack P logical rows into one physical row so the last dim is a multiple
    # of 128 (full-width vld/vst).  Generalized: pack = lcm(D, 128) // D, used
    # whenever the packed width stays modest.
    pack = 1
    if D % 128 != 0:
        p = ((D * 128) // math.gcd(D, 128)) // D
        if p * D <= 512:
            pack = p
    d_p = pack * D

    # Pad only to a multiple of `pack` (<= pack-1 rows); the common cases
    # (D multiple of 128, or N multiple of pack) copy nothing.
    n_rows = N
    if pack > 1 and N % pack != 0:
        extra = pack - (N % pack)
        feats = jnp.pad(feats, ((0, extra), (0, 0)))
        msg = jnp.pad(msg, ((0, extra), (0, 0)))
        n_rows = N + extra
    packed_rows = n_rows // pack
    feats_p = feats.reshape(packed_rows, d_p)
    msg_p = msg.reshape(packed_rows, d_p)

    # ---- tile sizing --------------------------------------------------------
    # Per packed row: 3 pipelined arrays x 2 buffers in the I/O dtype plus
    # ~6 full-tile f32 temporaries inside the body (casts, squares, broadcast
    # sums, factor).
    sublane = 8 if itemsize >= 4 else (16 if itemsize == 2 else 32)
    bytes_per_row = (6 * itemsize + 6 * 4) * d_p
    desired = max(sublane,
                  (vmem_budget_bytes // bytes_per_row) // sublane * sublane)
    # Keep >= 2 grid steps whenever possible so the "parallel" row axis can be
    # sharded across both TensorCores on v7x; never exceed the (rounded) array.
    half = pl.cdiv(pl.cdiv(packed_rows, 2), sublane) * sublane
    tile_rows = max(sublane, min(desired, half))
    grid = (pl.cdiv(packed_rows, tile_rows),)   # ragged final tile handled by Pallas

    working_set = (6 * itemsize + 6 * 4) * tile_rows * d_p
    if pack > 1:
        working_set += 2 * d_p * d_p * 4        # resident block-diag matrix
    vmem_limit = int(min(max(working_set + (4 << 20), 16 << 20), 48 << 20))

    row_spec = pl.BlockSpec((tile_rows, d_p), lambda i: (i, 0))

    if pack > 1:
        # Constant block-diagonal 0/1 matrix; same block index every step, so
        # it stays resident in VMEM (no per-step re-fetch).
        lane = jnp.arange(d_p)
        seg_mat = (lane[:, None] // D == lane[None, :] // D).astype(jnp.float32)
        kernel = _message_norm_packed_kernel
        in_specs = [
            pl.BlockSpec(memory_space=pltpu.MemorySpace.SMEM),  # scale (1,)
            pl.BlockSpec((d_p, d_p), lambda i: (0, 0)),         # block-diag
            row_spec,                                            # feats
            row_spec,                                            # msg
        ]
        operands = (scale, seg_mat, feats_p, msg_p)
    else:
        kernel = _message_norm_rowwise_kernel
        in_specs = [
            pl.BlockSpec(memory_space=pltpu.MemorySpace.SMEM),  # scale (1,)
            row_spec,                                            # feats
            row_spec,                                            # msg
        ]
        operands = (scale, feats_p, msg_p)

    out_p = pl.pallas_call(
        kernel,
        out_shape=jax.ShapeDtypeStruct((packed_rows, d_p), out_dtype),
        grid_spec=pltpu.PrefetchScalarGridSpec(
            num_scalar_prefetch=0,
            grid=grid,
            in_specs=in_specs,
            out_specs=row_spec,
        ),
        compiler_params=pltpu.CompilerParams(
            dimension_semantics=("parallel",),
            vmem_limit_bytes=vmem_limit,
        ),
    )(*operands)

    out = out_p.reshape(n_rows, D)
    return out[:N] if n_rows != N else out


def message_norm_ref(feats, msg, scale):
    """Pure-JAX reference mirroring the PyTorch module."""
    msg_norm = jnp.linalg.norm(msg, ord=2, axis=-1, keepdims=True)
    msg_n = msg / jnp.maximum(msg_norm, 1e-12)
    feats_norm = jnp.linalg.norm(feats, ord=2, axis=-1, keepdims=True)
    return msg_n * feats_norm * scale[0]


if __name__ == "__main__":
    key = jax.random.PRNGKey(0)
    k1, k2 = jax.random.split(key)
    # Parameter from __init__: scale = FloatTensor([1.0]) (learn_scale=False).
    scale = jnp.array([1.0], dtype=jnp.float32)

    def run_case(n, d):
        f = jax.random.normal(k1, (n, d), dtype=jnp.float32)
        m = jax.random.normal(k2, (n, d), dtype=jnp.float32)
        out = jax.block_until_ready(message_norm(f, m, scale))
        ref = message_norm_ref(f, m, scale)
        assert out.shape == (n, d)
        assert jnp.allclose(out, ref, atol=1e-4, rtol=1e-4), f"mismatch at {(n, d)}"

    run_case(128, 64)    # packed (pack=2, d_p=128), even grid of 2
    run_case(1000, 64)   # packed, ragged final tile (no wrapper pad / slice)
    run_case(250, 96)    # generalized packing (pack=4, d_p=384) + pad-to-pack path
    run_case(64, 128)    # unpacked lane-dense rowwise path

    print("KERNEL_OK")
</pallas_src>

<mosaic_0001>
module attributes {stable_mosaic.version = 11 : i64} {
  func.func @_message_norm_packed_kernel(%arg0: i32, %arg1: memref<1xf32, #tpu.memory_space<smem>>, %arg2: memref<128x128xf32, #tpu.memory_space<vmem>>, %arg3: memref<32x128xf32, #tpu.memory_space<vmem>>, %arg4: memref<32x128xf32, #tpu.memory_space<vmem>>, %arg5: memref<32x128xf32, #tpu.memory_space<vmem>>) attributes {dimension_semantics = [#tpu.dimension_semantics<parallel>], iteration_bounds = array<i64: 2>, scalar_prefetch = 0 : i64, scratch_operands = 0 : i64, tpu.core_type = #tpu.core_type<tc>, window_params = [{transform_indices = @transform_0, window_bounds = array<i64: 1>}, {pipeline_mode = #tpu.pipeline_mode<synchronous>, transform_indices = @transform_1, window_bounds = array<i64: 128, 128>}, {transform_indices = @transform_2, window_bounds = array<i64: 32, 128>}, {transform_indices = @transform_3, window_bounds = array<i64: 32, 128>}, {transform_indices = @transform_4, window_bounds = array<i64: 32, 128>}]} {
    %c0 = arith.constant 0 : index
    %c0_0 = arith.constant 0 : index
    %0 = vector.load %arg4[%c0, %c0_0] : memref<32x128xf32, #tpu.memory_space<vmem>>, vector<32x128xf32>
    %c0_1 = arith.constant 0 : index
    %c0_2 = arith.constant 0 : index
    %1 = vector.load %arg3[%c0_1, %c0_2] : memref<32x128xf32, #tpu.memory_space<vmem>>, vector<32x128xf32>
    %c0_3 = arith.constant 0 : index
    %2 = memref.load %arg1[%c0_3] : memref<1xf32, #tpu.memory_space<smem>>
    %c0_4 = arith.constant 0 : index
    %c0_5 = arith.constant 0 : index
    %3 = vector.load %arg2[%c0_4, %c0_5] : memref<128x128xf32, #tpu.memory_space<vmem>>, vector<128x128xf32>
    %4 = arith.mulf %0, %0 : vector<32x128xf32>
    %cst = arith.constant dense<0.000000e+00> : vector<32x128xf32>
    %5 = tpu.matmul %4, %3, %cst {dimension_numbers = #tpu.dot_dimension_numbers<[1], [0], [0], [1], [0, 0, 1, 1], [], []>, precision = #tpu.contract_precision<fp32>} : vector<32x128xf32>, vector<128x128xf32>, vector<32x128xf32> -> vector<32x128xf32>
    %6 = arith.mulf %1, %1 : vector<32x128xf32>
    %cst_6 = arith.constant dense<0.000000e+00> : vector<32x128xf32>
    %7 = tpu.matmul %6, %3, %cst_6 {dimension_numbers = #tpu.dot_dimension_numbers<[1], [0], [0], [1], [0, 0, 1, 1], [], []>, precision = #tpu.contract_precision<fp32>} : vector<32x128xf32>, vector<128x128xf32>, vector<32x128xf32> -> vector<32x128xf32>
    %8 = math.sqrt %7 : vector<32x128xf32>
    %cst_7 = arith.constant 1.000000e-24 : f32
    %9 = vector.broadcast %cst_7 : f32 to vector<32x128xf32>
    %10 = arith.maximumf %5, %9 : vector<32x128xf32>
    %11 = math.rsqrt %10 : vector<32x128xf32>
    %12 = arith.mulf %8, %11 : vector<32x128xf32>
    %13 = vector.broadcast %2 : f32 to vector<32x128xf32>
    %14 = arith.mulf %12, %13 : vector<32x128xf32>
    %15 = arith.mulf %0, %14 : vector<32x128xf32>
    %c0_8 = arith.constant 0 : index
    %c0_9 = arith.constant 0 : index
    %16 = vector.load %arg5[%c0_8, %c0_9] : memref<32x128xf32, #tpu.memory_space<vmem>>, vector<32x128xf32>
    tpu.vector_store %arg5[%c0_8, %c0_9], %15 {strides = array<i32>} : memref<32x128xf32, #tpu.memory_space<vmem>>, vector<32x128xf32>,
    return
  }
  func.func @transform_0(%arg0: i32) -> i32 {
    %c0_i32 = arith.constant 0 : i32
    %c0_i32_0 = arith.constant 0 : i32
    return %c0_i32 : i32
  }
  func.func @transform_1(%arg0: i32) -> (i32, i32) {
    %c0_i32 = arith.constant 0 : i32
    %c0_i32_0 = arith.constant 0 : i32
    %c0_i32_1 = arith.constant 0 : i32
    return %c0_i32, %c0_i32_0 : i32, i32
  }
  func.func @transform_2(%arg0: i32) -> (i32, i32) {
    %c0_i32 = arith.constant 0 : i32
    %c0_i32_0 = arith.constant 0 : i32
    return %arg0, %c0_i32 : i32, i32
  }
  func.func @transform_3(%arg0: i32) -> (i32, i32) {
    %c0_i32 = arith.constant 0 : i32
    %c0_i32_0 = arith.constant 0 : i32
    return %arg0, %c0_i32 : i32, i32
  }
  func.func @transform_4(%arg0: i32) -> (i32, i32) {
    %c0_i32 = arith.constant 0 : i32
    %c0_i32_0 = arith.constant 0 : i32
    return %arg0, %c0_i32 : i32, i32
  }
}

</mosaic_0001>

<bundles_post_ra>
// kernel: tpu_custom_call.1
= control target key start
LH: loop header
LB: loop body
LE: loop exit
PB: predicated region body
PF: predicated region fallthrough
CT: control target
= control target key end

     0   :  { %s3961_s0 = inlined_call_operand.<no memory space> [shape: f32[1], index: 0, kind: input, shape index: {}]   ;;  %s3962_s1 = inlined_call_operand.hbm [shape: f32[128,128], index: 1, kind: input, shape index: {}]   ;;  %s3963_s2 = inlined_call_operand.hbm [shape: f32[64,128], index: 2, kind: input, shape index: {}]   ;;  %s3964_s3 = inlined_call_operand.hbm [shape: f32[64,128], index: 3, kind: input, shape index: {}]   ;;  %s3965_s4 = inlined_call_operand.hbm [shape: f32[64,128], index: 4, kind: output, shape index: {}]  }
   0x1   :  { %9 = sst [smem:[#allocation2]] %s3961_s0 }
   0x2   :  { %10 = vsyncpa [#allocation4], 0 }
   0x3   :  { %11 = vsyncpa [#allocation7], 0 }
   0x4   :  { %13 = vsyncpa [#allocation7 + $0x1], 0 }
   0x5   :  { %14 = vsyncpa [#allocation5], 0 }
   0x6   :  { %16 = vsyncpa [#allocation5 + $0x1], 0  ;;  %s3010_s17 = smov 0   ;;  %s3012_s18 = smov 0  }
   0x7   :  { %s3014_s19 = smov 0   ;;  %s3016_s20 = smov 0  }
   0x8 LB: > { %s3031_s0 = sadd.s32 1, %s2972_s20   ;;  %s71_s21 = sadd.s32 1, %s2968_s19  ;;  %s2972_s20 = sphi %s3016_s20, %s4043_s20   ;;  %s2968_s19 = sphi %s3014_s19, %s4042_s19   ;;  %s2964_s18 = sphi %s3012_s18, %s4041_s18   ;;  %s2960_s17 = sphi %s3010_s17, %s4040_s17  }
   0x9   : > { %s68_s22 = ssub.s32 %s2972_s20, %s3031_s0  ;;  %p78_p0 = scmp.ne.s32.totalorder %s2968_s19, %s2964_s18 }
   0xa   : > { %p69_p1 = scmp.eq.s32.totalorder %s68_s22, 0  ;;  %p79_p2 = scmp.eq.s32.totalorder %s2972_s20, 0 }
   0xb   : > { %p2762_p5 = scmp.lt.s32.totalorder %s2972_s20, 2  ;;  %s176_s24 = sand.u32 1, %s2972_s20  }
   0xc   : > { %s3040_s23 = scalar_select %p69_p1, %s2968_s19, %s71_s21  }
   0xd   : > { %p80_p3 = por %p79_p2, %p78_p0  ;;  %s178_s25 = sand.u32 1, %s2968_s19  }
   0xe   : > { %s3049_s26 = sshll.u32 %s178_s25, 5  ;;  %s2037_s27 = sshll.u32 %s2972_s20, 9 }
   0xf   : > { %s3057_s30 = scalar_lea.hbm %s3963_s2, %s2037_s27  ;;  %s180_s5 = scalar_lea.vmem [#allocation6], %s3049_s26 }
  0x10   : > { %s187_s6 = sshll.u32 %s180_s5, 4  ;;  %p3060_p6 = pnand %p2762_p5, %p80_p3  ;;  %s3064_s6 = int_to_ptr.vmem [resolvable:$true] %s187_s6 }
  0x11   : > { %s3066_s8 = scalar_lea.sflag [#allocation7], %s176_s24  ;;  %s2822_s9 = scalar_lea.hbm %s3057_s30, 512 }
  0x12   : > { %p2823_p7 = scmp.ne.s32.totalorder %s3057_s30, %s2822_s9  ;;  %p2824_p8 = pneg %p3060_p6 }
  0x13   : > { %s2827_s12 = scalar_lea.hbm %s3963_s2, 1024  ;;  %p2828_p11 = scmp.lt.s32.totalorder %s3057_s30, %s3963_s2 }
  0x14   : > { %p2825_p9 = pnand %p2824_p8, %p2823_p7  ;;  %p2829_p12 = scmp.lt.s32.totalorder %s2827_s12, %s2822_s9 }
  0x16   : > { %p2826_p10 = pneg %p2825_p9  ;;  %p2830_p13 = por %p2829_p12, %p2828_p11 }
  0x18   : > { %p2831_p1 = pnand %p2830_p13, %p2826_p10 }
  0x1a   : > { %2834 = shalt.err (!%p2831_p1)
}
  0x1b   : > { %s2835_s15 = scalar_lea.vmem %s3064_s6, 512  ;;  %s2974_s16 = smov [#allocation6]  }
  0x1c   : > { %p2836_p2 = scmp.ne.s32.totalorder %s3064_s6, %s2835_s15  ;;  %s2840_s21 = sshll.u32 %s2974_s16, 4  ;;  %s2841_s21 = int_to_ptr.vmem [resolvable:$false] %s2840_s21 }
  0x1d   : > { %s2842_s22 = scalar_lea.vmem %s2841_s21, 1024  ;;  %p2843_p7 = scmp.lt.s32.totalorder %s3064_s6, %s2841_s21 }
  0x1e   : > { %p2838_p3 = pnand %p2836_p2, %p2824_p8  ;;  %p2844_p9 = scmp.lt.s32.totalorder %s2842_s22, %s2835_s15 }
  0x20   : > { %p2839_p5 = pneg %p2838_p3  ;;  %p2845_p4 = por %p2844_p9, %p2843_p7 }
  0x22   : > { %p2846_p11 = pnand %p2845_p4, %p2839_p5 }
  0x24   : > { %2849 = shalt.err (!%p2846_p11)
}
  0x25   : > { %s2975_s24 = smov 128   ;;  %s2976_s25 = smov 8  }
  0x26   : > { %2753 = dma.hbm_to_vmem [thread:$0]  (!%p3060_p6), %s3057_s30, 512, %s3064_s6, %s3066_s8, %s2975_s24, %s2975_s24, %s2976_s25  }
  0x27   : > { %s201_s28 = scalar_lea.vmem [#allocation8], %s3049_s26  ;;  %s3098_s5 = sadd.s32 4294967295, %s2972_s20  }
  0x28   : > { %s208_s29 = sshll.u32 %s201_s28, 4  ;;  %s2017_s9 = sadd.s32 4294967294, %s2972_s20   ;;  %s3131_s29 = int_to_ptr.vmem [resolvable:$true] %s208_s29 }
  0x29   : > { %p84_p4 = scmp.ne.s32.totalorder %s2964_s18, %s2960_s17  ;;  %p3966_p10 = scmp.eq.s32.totalorder %s3098_s5, 0 }
  0x2a   : > { %p134_p12 = scmp.eq.s32.totalorder %s3098_s5, 1  ;;  %p140_p13 = scmp.eq.s32.totalorder %s2017_s9, 1 }
  0x2b   : > { %p3107_p1 = por %p3966_p10, %p84_p4  ;;  %p2018_p2 = scmp.ge.s32.totalorder %s2972_s20, 1 }
  0x2c   : > { %p3115_p3 = por %p134_p12, %p78_p0  ;;  %p3119_p5 = por %p140_p13, %p84_p4 }
  0x2d   : > { %s3997_s10 = scalar_select %p3107_p1, 1, 0 }
  0x2e   : > { %s3998_s26 = scalar_select %p3115_p3, 1, 0 }
  0x2f   : > { %s3999_s30 = scalar_select %p3119_p5, 1, 0 }
  0x30   : > { %p147_p7 = scmp.lt.s32.totalorder %s2972_s20, 3  ;;  %s3129_s12 = scalar_lea.hbm %s3964_s3, %s2037_s27 }
  0x31   : > { %s2977_s14 = smov [#allocation3]   ;;  %s2850_s16 = scalar_lea.hbm %s3129_s12, 512 }
  0x32   : > { %p3133_p0 = pnand %p2018_p2, %p147_p7  ;;  %s3137_s15 = sshll.u32 %s2977_s14, 4  ;;  %s163_s15 = int_to_ptr.vmem [resolvable:$true] %s3137_s15 }
  0x33   : > { %p2851_p11 = scmp.ne.s32.totalorder %s3129_s12, %s2850_s16  ;;  %s2855_s22 = scalar_lea.hbm %s3964_s3, 1024 }
  0x34   : > { %p2856_p13 = scmp.lt.s32.totalorder %s3129_s12, %s3964_s3  ;;  %p2857_p2 = scmp.lt.s32.totalorder %s2855_s22, %s2850_s16 }
  0x35   : > { %p2853_p4 = pnand %p2851_p11, %p2824_p8 }
  0x36   : > { %p2858_p7 = por %p2857_p2, %p2856_p13 }
  0x37   : > { %p2854_p12 = pneg %p2853_p4 }
  0x39   : > { %p2859_p10 = pnand %p2858_p7, %p2854_p12 }
  0x3b   : > { %2862 = shalt.err (!%p2859_p10)
}
  0x3c   : > { %s2863_s6 = scalar_lea.vmem %s3131_s29, 512  ;;  %s2978_s11 = smov [#allocation8]  }
  0x3d   : > { %p2864_p9 = scmp.ne.s32.totalorder %s3131_s29, %s2863_s6  ;;  %s2868_s14 = sshll.u32 %s2978_s11, 4  ;;  %s2869_s14 = int_to_ptr.vmem [resolvable:$false] %s2868_s14 }
  0x3e   : > { %s2870_s27 = scalar_lea.vmem %s2869_s14, 1024  ;;  %p2871_p5 = scmp.lt.s32.totalorder %s3131_s29, %s2869_s14 }
  0x3f   : > { %p2866_p11 = pnand %p2864_p9, %p2824_p8  ;;  %p2872_p3 = scmp.lt.s32.totalorder %s2870_s27, %s2863_s6 }
  0x41   : > { %p2867_p4 = pneg %p2866_p11  ;;  %p2873_p1 = por %p2872_p3, %p2871_p5 }
  0x43   : > { %p2874_p13 = pnand %p2873_p1, %p2867_p4 }
  0x45   : > { %2877 = shalt.err (!%p2874_p13)
}
  0x46   : > { %2756 = dma.hbm_to_vmem [thread:$0]  (!%p3060_p6), %s3129_s12, 512, %s3131_s29, %s3066_s8, %s2975_s24, %s2975_s24, %s2976_s25  }
  0x47   : > { %p4001_p8 = scmp.eq.s32.totalorder %s3098_s5, 0  ;;  %p4002_p10 = pneg %p3133_p0 }
  0x48   : > { %s2889_s16 = scalar_lea.vmem %s163_s15, 2048  ;;  %p2897_p2 = scmp.lt.s32.totalorder %s163_s15, %s163_s15 }
  0x49   : > { %p2747_p9 = pnand %p4002_p10, %p4001_p8  ;;  %p2890_p1 = scmp.ne.s32.totalorder %s163_s15, %s2889_s16 }
  0x4a   : > { %p2898_p7 = scmp.lt.s32.totalorder %s2889_s16, %s2889_s16 }
  0x4b   : > { %p2880_p3 = pneg %p2747_p9 }
  0x4c   : > { %p2899_p11 = por %p2898_p7, %p2897_p2 }
  0x4d   : > { %p2892_p5 = pnand %p2890_p1, %p2880_p3 }
  0x4f   : > { %p2893_p12 = pneg %p2892_p5 }
  0x51   : > { %p2900_p4 = pnand %p2899_p11, %p2893_p12 }
  0x53   : > { %2903 = shalt.err (!%p2900_p4)
}
  0x54   : > { %2749 = dma.hbm_to_vmem [thread:$0]  (!%p2747_p9), %s3962_s1, 2048, %s163_s15, [#allocation4], %s2975_s24, %s2975_s24, %s2976_s25  }
  0x55   : > { %220 = sbr.rel (%p3133_p0) target bundleno = 561 (0x231), region = 36 }
  0x5a   : > { %p4003_p6 = scmp.eq.s32.totalorder %s3098_s5, 0 }
  0x5c   : > { %2947 = dma.done.wait (%p4003_p6), [#allocation4], 2048   ;;  %p4004_p13 = pmov %p4003_p6 }
  0x5d   : > { %s226_s29 = sand.u32 1, %s3098_s5   ;;  %s228_s12 = sand.u32 1, %s2964_s18  }
  0x5e   : > { %2949 = vsyncadd (%p4004_p13), [#allocation4], 4294965248  ;;  %s3189_s21 = sshll.u32 %s228_s12, 5  ;;  %s227_s24 = scalar_lea.sflag [#allocation7], %s226_s29 }
  0x5f   : > { %s3192_s25 = scalar_lea.vmem [#allocation6], %s3189_s21  ;;  %p4005_p0 = scmp.ne.s32.totalorder %s3997_s10, 0 }
  0x61   : > { %2951 = dma.done.wait (%p4005_p0), %s227_s24, 1024  }
  0x62   : > { %2953 = vsyncadd (%p4005_p0), %s227_s24, 4294966272  ;;  %v296_v0 = vld [vmem:[#allocation3 + $0x78] sm:$0xff]  ;;  %v295_v1 = vld [vmem:[#allocation3 + $0x70] sm:$0xff]  ;;  %s3295_s10 = scalar_lea.vmem [#allocation8], %s3189_s21  ;;  %s280_s13 = sld [smem:[#allocation2]] }
  0x63   : > { %v294_v2 = vld [vmem:[#allocation3 + $0x68] sm:$0xff]  ;;  %v3198_v3 = vand.u32 4294901760, %v296_v0  ;;  %v3200_v4 = vand.u32 4294901760, %v295_v1  ;;  %v293_v6 = vld [vmem:[#allocation3 + $0x60] sm:$0xff]  ;;  %v292_v7 = vld [vmem:[#allocation3 + $0x58] sm:$0xff]  ;;  %s268_s15 = scalar_lea.vmem [#allocation9], %s3189_s21 }
  0x64   : > { %v3202_v5 = vand.u32 4294901760, %v294_v2  ;;  %v291_v8 = vld [vmem:[#allocation3 + $0x50] sm:$0xff]  ;;  %v3204_v9 = vand.u32 4294901760, %v293_v6  ;;  %v3206_v10 = vand.u32 4294901760, %v292_v7  ;;  %v290_v12 = vld [vmem:[#allocation3 + $0x48] sm:$0xff]  ;;  %v289_v13 = vld [vmem:[#allocation3 + $0x40] sm:$0xff] }
  0x65   : > { %v3208_v11 = vand.u32 4294901760, %v291_v8  ;;  %2280 = vmatprep.subr.mxu0 %v3198_v3  ;;  %v3212_v14 = vsub.f32 %v296_v0, %v3198_v3  ;;  %v3215_v15 = vsub.f32 %v295_v1, %v3200_v4  ;;  %v3217_v16 = vand.u32 4294901760, %v290_v12  ;;  %v288_v18 = vld [vmem:[#allocation3 + $0x38] sm:$0xff]  ;;  %v287_v28 = vld [vmem:[#allocation3 + $0x30] sm:$0xff]  ;;  %v286_v35 = vld [vmem:[#allocation3 + $0x28] sm:$0xff]  ;;  %s2039_s22 = sshll.u32 %s3098_s5, 9 }
  0x66   : > { %v3220_v17 = vsub.f32 %v294_v2, %v3202_v5  ;;  %2281 = vmatpush3.msra.mxu0 %v3198_v3  ;;  %v3224_v19 = vsub.f32 %v293_v6, %v3204_v9  ;;  %v3227_v20 = vsub.f32 %v292_v7, %v3206_v10  ;;  %v3239_v24 = vand.u32 4294901760, %v289_v13  ;;  %v285_v42 = vld [vmem:[#allocation3 + $0x20] sm:$0xff]  ;;  %v284_v49 = vld [vmem:[#allocation3 + $0x18] sm:$0xff]  ;;  %v273_v50 = vld [vmem:[%s3295_s10 + $0x8] sm:$0xff]  ;;  %s1912_s28 = sshll.u32 %s268_s15, 4  ;;  %s3913_s11 = scalar_lea.hbm %s3965_s4, %s2039_s22  ;;  %s3915_s28 = int_to_ptr.vmem [resolvable:$true] %s1912_s28 }
  0x67   : > { %2282 = vmatprep.subr.mxu0 %v3200_v4  ;;  %v3231_v21 = vand.u32 4294901760, %v3212_v14  ;;  %v3234_v22 = vand.u32 4294901760, %v3215_v15  ;;  %v3245_v26 = vand.u32 4294901760, %v288_v18  ;;  %v3251_v29 = vsub.f32 %v291_v8, %v3208_v11  ;;  %v272_v47 = vld [vmem:[%s3295_s10] sm:$0xff]  ;;  %v283_v60 = vld [vmem:[#allocation3 + $0x10] sm:$0xff]  ;;  %v282_v6 = vld [vmem:[#allocation3 + $0x8] sm:$0xff] }
  0x68   : > { %v3237_v23 = vand.u32 4294901760, %v3220_v17  ;;  %2283 = vmatpush3.msra.mxu0 %v3200_v4  ;;  %v3243_v25 = vand.u32 4294901760, %v3224_v19  ;;  %v3248_v27 = vand.u32 4294901760, %v3227_v20  ;;  %v3261_v33 = vsub.f32 %v290_v12, %v3217_v16  ;;  %s3920_s5 = scalar_lea.sflag [#allocation5], %s228_s12  ;;  %s2904_s14 = scalar_lea.vmem %s3915_s28, 512 }
  0x69   : > { %2284 = vmatprep.subr.mxu0 %v3202_v5  ;;  %v426_v30 = vsub.f32 %v3212_v14, %v3231_v21  ;;  %v433_v31 = vsub.f32 %v3215_v15, %v3234_v22  ;;  %v3265_v34 = vand.u32 4294901760, %v3251_v29  ;;  %v3274_v39 = vand.u32 4294901760, %v287_v28  ;;  %p2905_p8 = scmp.ne.s32.totalorder %s3915_s28, %s2904_s14  ;;  %p4037_p10 = scmp.ne.s32.totalorder %s3998_s26, 0 }
  0x6a   : > { %v440_v32 = vsub.f32 %v3220_v17, %v3237_v23  ;;  %2285 = vmatpush3.msra.mxu0 %v3202_v5  ;;  %v447_v38 = vsub.f32 %v3224_v19, %v3243_v25  ;;  %v454_v40 = vsub.f32 %v3227_v20, %v3248_v27  ;;  %v3280_v41 = vand.u32 4294901760, %v3261_v33  ;;  %s2979_s27 = smov [#allocation9]  }
  0x6b   : > { %2286 = vmatprep.subr.mxu0 %v3204_v9  ;;  %v3268_v36 = vand.u32 4294901760, %v426_v30  ;;  %v3270_v37 = vand.u32 4294901760, %v433_v31  ;;  %v3283_v43 = vsub.f32 %v289_v13, %v3239_v24  ;;  %v3289_v45 = vand.u32 4294901760, %v286_v35  ;;  %v281_v30 = vld [vmem:[#allocation3] sm:$0xff]  ;;  %p2906_p9 = pnand %p2905_p8, %p4037_p10  ;;  %s2908_s16 = sshll.u32 %s2979_s27, 4  ;;  %s2909_s16 = int_to_ptr.vmem [resolvable:$false] %s2908_s16 }
  0x6c   : > { %2287 = vmatpush3.msra.mxu0 %v3204_v9  ;;  %v3287_v44 = vand.u32 4294901760, %v440_v32  ;;  %v3292_v46 = vsub.f32 %v288_v18, %v3245_v26  ;;  %v461_v48 = vsub.f32 %v3251_v29, %v3265_v34  ;;  %v3305_v51 = vand.u32 4294901760, %v447_v38  ;;  %s2910_s7 = scalar_lea.vmem %s2909_s16, 1024  ;;  %p2911_p1 = scmp.lt.s32.totalorder %s3915_s28, %s2909_s16 }
  0x6d   : > { %4006 = vst [vmem:[#allocation13_spill] sm:$0xff] %v3283_v43  ;;  %2288 = vmatprep.subr.mxu0 %v3206_v10  ;;  %2318 = vmatprep.subr.mxu1 %v3268_v36  ;;  %v3307_v52 = vand.u32 4294901760, %v285_v42  ;;  %v3310_v53 = vand.u32 4294901760, %v3283_v43  ;;  %v3313_v54 = vsub.f32 %v287_v28, %v3274_v39  ;;  %v3317_v55 = vand.u32 4294901760, %v454_v40  ;;  %p2907_p3 = pneg %p2906_p9  ;;  %p2912_p5 = scmp.lt.s32.totalorder %s2910_s7, %s2904_s14 }
  0x6e   : > { %4007 = vst [vmem:[#allocation14_spill] sm:$0xff] %v3287_v44  ;;  %4008 = vst [vmem:[#allocation15_spill] sm:$0xff] %v3292_v46  ;;  %2289 = vmatpush3.msra.mxu0 %v3206_v10  ;;  %2319 = vmatpush3.msra.mxu1 %v3268_v36  ;;  %v468_v56 = vsub.f32 %v3261_v33, %v3280_v41  ;;  %v297_v57 = vmul.f32 %v272_v47, %v272_v47  ;;  %v3323_v58 = vand.u32 4294901760, %v284_v49 }
  0x6f   : > { %2290 = vmatprep.subr.mxu0 %v3208_v11  ;;  %2320 = vmatprep.subr.mxu1 %v3270_v37  ;;  %4009 = vst [vmem:[#allocation16_spill] sm:$0xff] %v3305_v51  ;;  %4010 = vst [vmem:[#allocation17_spill] sm:$0xff] %v3313_v54  ;;  %v3326_v59 = vand.u32 4294901760, %v3292_v46  ;;  %v3329_v61 = vsub.f32 %v286_v35, %v3289_v45  ;;  %v298_v62 = vmul.f32 %v273_v50, %v273_v50  ;;  %p2913_p12 = por %p2912_p5, %p2911_p1 }
  0x70   : > { %2291 = vmatpush3.msra.mxu0 %v3208_v11  ;;  %2321 = vmatpush3.msra.mxu1 %v3270_v37  ;;  %4011 = vst [vmem:[#allocation18_spill] sm:$0xff] %v3317_v55  ;;  %v3333_v63 = vand.u32 4294901760, %v461_v48  ;;  %v3335_v0 = vand.u32 4294901760, %v297_v57  ;;  %v475_v1 = vsub.f32 %v3283_v43, %v3310_v53  ;;  %v3342_v2 = vand.u32 4294901760, %v3313_v54 }
  0x71   : > { %2292 = vmatprep.subr.mxu0 %v3217_v16  ;;  %2322 = vmatprep.subr.mxu1 %v3287_v44  ;;  %v3345_v7 = vsub.f32 %v285_v42, %v3307_v52  ;;  %v3347_v8 = vand.u32 4294901760, %v298_v62  ;;  %v3351_v12 = vand.u32 4294901760, %v468_v56  ;;  %v3353_v13 = vand.u32 4294901760, %v283_v60  ;;  %p2914_p2 = pnand %p2913_p12, %p2907_p3 }
  0x72   : > { %2293 = vmatpush3.msra.mxu0 %v3217_v16  ;;  %2323 = vmatpush3.msra.mxu1 %v3287_v44  ;;  %4012 = vst [vmem:[#allocation19_spill] sm:$0xff] %v3333_v63  ;;  %v482_v18 = vsub.f32 %v3292_v46, %v3326_v59  ;;  %v3360_v28 = vand.u32 4294901760, %v3329_v61  ;;  %v3363_v31 = vsub.f32 %v297_v57, %v3335_v0  ;;  %v3370_v35 = vand.u32 4294901760, %v282_v6 }
  0x73   : > { %2294 = vmatprep.subr.mxu0 %v3239_v24  ;;  %2324 = vmatprep.subr.mxu1 %v3305_v51  ;;  %4013 = vst [vmem:[#allocation20_spill] sm:$0xff] %v3351_v12  ;;  %v3366_v32 = vsub.f32 %v284_v49, %v3323_v58  ;;  %v3373_v38 = vsub.f32 %v298_v62, %v3347_v8  ;;  %v3377_v40 = vand.u32 4294901760, %v475_v1  ;;  %v3382_v47 = vand.u32 4294901760, %v3345_v7 }
  0x74   : > { %2295 = vmatpush3.msra.mxu0 %v3239_v24  ;;  %2325 = vmatpush3.msra.mxu1 %v3305_v51  ;;  %v489_v42 = vsub.f32 %v3313_v54, %v3342_v2  ;;  %v3386_v48 = vand.u32 4294901760, %v281_v30  ;;  %v3389_v49 = vsub.f32 %v283_v60, %v3353_v13  ;;  %v3393_v50 = vand.u32 4294901760, %v482_v18 }
  0x75   : > { %2296 = vmatprep.subr.mxu0 %v3245_v26  ;;  %2326 = vmatprep.subr.mxu1 %v3317_v55  ;;  %4014 = vst [vmem:[#allocation21_spill] sm:$0xff] %v3377_v40  ;;  %v496_v56 = vsub.f32 %v3329_v61, %v3360_v28  ;;  %v3399_v62 = vand.u32 4294901760, %v3366_v32  ;;  %v3405_v1 = vsub.f32 %v282_v6, %v3370_v35 }
  0x76   : > { %2297 = vmatpush3.msra.mxu0 %v3245_v26  ;;  %2327 = vmatpush3.msra.mxu1 %v3317_v55  ;;  %4015 = vst [vmem:[#allocation22_spill] sm:$0xff] %v3393_v50  ;;  %v3409_v18 = vand.u32 4294901760, %v489_v42  ;;  %v503_v57 = vsub.f32 %v3345_v7, %v3382_v47  ;;  %v3419_v60 = vsub.f32 %v281_v30, %v3386_v48  ;;  %v4018_v42 = vand.u32 4294901760, %v3363_v31 }
  0x77   : > { %2298 = vmatprep.subr.mxu0 %v3274_v39  ;;  %2328 = vmatprep.subr.mxu1 %v3333_v63  ;;  %v3423_v6 = vand.u32 4294901760, %v496_v56  ;;  %v510_v55 = vsub.f32 %v3366_v32, %v3399_v62  ;;  %v4019_v30 = vand.u32 4294901760, %v3373_v38  ;;  %v3436_v51 = vand.u32 4294901760, %v3405_v1 }
  0x78   : > { %2299 = vmatpush3.msra.mxu0 %v3274_v39  ;;  %2329 = vmatpush3.msra.mxu1 %v3333_v63  ;;  %4016 = vst [vmem:[#allocation23_spill] sm:$0xff] %v3409_v18  ;;  %v385_v63 = vsub.f32 %v3363_v31, %v4018_v42  ;;  %v3440_v56 = vand.u32 4294901760, %v503_v57 }
  0x79   : > { %2300 = vmatprep.subr.mxu0 %v3289_v45  ;;  %2330 = vmatprep.subr.mxu1 %v3351_v12  ;;  %4017 = vst [vmem:[#allocation24_spill] sm:$0xff] %v3423_v6  ;;  %v3451_v44 = vand.u32 4294901760, %v510_v55 }
  0x7a   : > { %2301 = vmatpush3.msra.mxu0 %v3289_v45  ;;  %2331 = vmatpush3.msra.mxu1 %v3351_v12  ;;  %v3416_v12 = vand.u32 4294901760, %v3389_v49  ;;  %4020 = vst [vmem:[#allocation25_spill] sm:$0xff] %v3440_v56 }
  0x7b   : > { %2302 = vmatprep.subr.mxu0 %v3307_v52  ;;  %2332 = vmatprep.subr.mxu1 %v3377_v40 }
  0x7c   : > { %2303 = vmatpush3.msra.mxu0 %v3307_v52  ;;  %2333 = vmatpush3.msra.mxu1 %v3377_v40  ;;  %v395_v40 = vsub.f32 %v3373_v38, %v4019_v30  ;;  %v517_v42 = vsub.f32 %v3389_v49, %v3416_v12  ;;  %v386_v30 = vand.u32 4294901760, %v385_v63 }
  0x7d   : > { %2304 = vmatprep.subr.mxu0 %v3323_v58  ;;  %2334 = vmatprep.subr.mxu1 %v3393_v50 }
  0x7e   : > { %2305 = vmatpush3.msra.mxu0 %v3323_v58  ;;  %2335 = vmatpush3.msra.mxu1 %v3393_v50  ;;  %v3447_v50 = vand.u32 4294901760, %v3419_v60  ;;  %v396_v57 = vand.u32 4294901760, %v395_v40  ;;  %v3461_v55 = vand.u32 4294901760, %v517_v42 }
  0x7f   : > { %2306 = vmatprep.subr.mxu0 %v3353_v13  ;;  %2336 = vmatprep.subr.mxu1 %v3409_v18 }
  0x80   : > { %2307 = vmatpush3.msra.mxu0 %v3353_v13  ;;  %2337 = vmatpush3.msra.mxu1 %v3409_v18  ;;  %v524_v18 = vsub.f32 %v3405_v1, %v3436_v51  ;;  %v531_v63 = vsub.f32 %v3419_v60, %v3447_v50 }
  0x81   : > { %2308 = vmatprep.subr.mxu0 %v3370_v35  ;;  %2338 = vmatprep.subr.mxu1 %v3423_v6 }
  0x82   : > { %2309 = vmatpush3.msra.mxu0 %v3370_v35  ;;  %2339 = vmatpush3.msra.mxu1 %v3423_v6  ;;  %v3467_v40 = vand.u32 4294901760, %v524_v18  ;;  %v274_v6 = vld [vmem:[%s3295_s10 + $0x10] sm:$0xff]  ;;  %v3474_v42 = vand.u32 4294901760, %v531_v63 }
  0x83   : > { %2310 = vmatprep.subr.mxu0 %v3386_v48  ;;  %2340 = vmatprep.subr.mxu1 %v3440_v56  ;;  %v299_v18 = vmul.f32 %v274_v6, %v274_v6 }
  0x84   : > { %2311 = vmatpush3.msra.mxu0 %v3386_v48  ;;  %2341 = vmatpush3.msra.mxu1 %v3440_v56  ;;  %v275_v56 = vld [vmem:[%s3295_s10 + $0x18] sm:$0xff] }
  0x85   : > { %2312 = vmatprep.mubr.f32.mxu0 %v386_v30  ;;  %2342 = vmatprep.subr.mxu1 %v3451_v44  ;;  %v300_v30 = vmul.f32 %v275_v56, %v275_v56 }
  0x86   : > { %2356 = vmatprep.subr.mxu0 %v3212_v14  ;;  %2313 = vmatmul.mubr.f32.vlgmr.msra.gmra.mxu0 %v396_v57  ;;  %v3489_v57 = vand.u32 4294901760, %v299_v18 }
  0x87   : > { %2343 = vmatpush3.msra.mxu1 %v3451_v44  ;;  %2357 = vmatpush3.msra.mxu0 %v3212_v14  ;;  %v3493_v6 = vand.u32 4294901760, %v300_v30 }
  0x88   : > { %2344 = vmatprep.subr.mxu1 %v3461_v55  ;;  %2358 = vmatprep.subr.mxu0 %v3215_v15  ;;  %v3502_v56 = vsub.f32 %v299_v18, %v3489_v57 }
  0x89   : > { %2345 = vmatpush3.msra.mxu1 %v3461_v55  ;;  %2359 = vmatpush3.msra.mxu0 %v3215_v15  ;;  %v3507_v63 = vsub.f32 %v300_v30, %v3493_v6 }
  0x8a   : > { %2346 = vmatprep.subr.mxu1 %v3467_v40  ;;  %2360 = vmatprep.subr.mxu0 %v3220_v17  ;;  %v3993_v18 = vand.u32 4294901760, %v3502_v56 }
  0x8b   : > { %2347 = vmatpush3.msra.mxu1 %v3467_v40  ;;  %2361 = vmatpush3.msra.mxu0 %v3220_v17  ;;  %v414_v30 = vand.u32 4294901760, %v3507_v63 }
  0x8c   : > { %2348 = vmatprep.subr.mxu1 %v3474_v42  ;;  %2362 = vmatprep.subr.mxu0 %v3224_v19 }
  0x8d   : > { %2349 = vmatpush3.msra.mxu1 %v3474_v42  ;;  %2350 = vmatprep.mubr.f32.mxu1 %v3335_v0 }
  0x8e   : > { %2363 = vmatpush3.msra.mxu0 %v3224_v19  ;;  %2351 = vmatmul.mubr.f32.vlgmr.msra.gmra.mxu1 %v3347_v8 }
  0x8f   : > { %2364 = vmatprep.subr.mxu0 %v3227_v20  ;;  %2394 = vmatprep.subr.mxu1 %v3198_v3 }
  0x90   : > { %2365 = vmatpush3.msra.mxu0 %v3227_v20  ;;  %2395 = vmatpush3.msra.mxu1 %v3198_v3 }
  0x91   : > { %2366 = vmatprep.subr.mxu0 %v3251_v29  ;;  %2396 = vmatprep.subr.mxu1 %v3200_v4 }
  0x92   : > { %2367 = vmatpush3.msra.mxu0 %v3251_v29  ;;  %2397 = vmatpush3.msra.mxu1 %v3200_v4 }
  0x93   : > { %2368 = vmatprep.subr.mxu0 %v3261_v33  ;;  %2398 = vmatprep.subr.mxu1 %v3202_v5 }
  0x94   : > { %2369 = vmatpush3.msra.mxu0 %v3261_v33  ;;  %2399 = vmatpush3.msra.mxu1 %v3202_v5 }
  0x95   : > { %2370 = vmatprep.subr.mxu0 %v3283_v43  ;;  %2400 = vmatprep.subr.mxu1 %v3204_v9 }
  0x96   : > { %2371 = vmatpush3.msra.mxu0 %v3283_v43  ;;  %2401 = vmatpush3.msra.mxu1 %v3204_v9  ;;  %v405_v43 = vsub.f32 %v3502_v56, %v3993_v18 }
  0x97   : > { %2372 = vmatprep.subr.mxu0 %v3292_v46  ;;  %2402 = vmatprep.subr.mxu1 %v3206_v10 }
  0x98   : > { %2373 = vmatpush3.msra.mxu0 %v3292_v46  ;;  %2403 = vmatpush3.msra.mxu1 %v3206_v10  ;;  %v415_v46 = vsub.f32 %v3507_v63, %v414_v30  ;;  %v406_v18 = vand.u32 4294901760, %v405_v43  ;;  %v4021_v43 = vand.u32 4294901760, %v3363_v31 }
  0x99   : > { %2374 = vmatprep.subr.mxu0 %v3313_v54  ;;  %2404 = vmatprep.subr.mxu1 %v3208_v11 }
  0x9a   : > { %2375 = vmatpush3.msra.mxu0 %v3313_v54  ;;  %2405 = vmatpush3.msra.mxu1 %v3208_v11  ;;  %v416_v54 = vand.u32 4294901760, %v415_v46  ;;  %v4022_v46 = vand.u32 4294901760, %v3373_v38 }
  0x9b   : > { %2376 = vmatprep.subr.mxu0 %v3329_v61  ;;  %2406 = vmatprep.subr.mxu1 %v3217_v16 }
  0x9c   : > { %2377 = vmatpush3.msra.mxu0 %v3329_v61  ;;  %2407 = vmatpush3.msra.mxu1 %v3217_v16 }
  0x9d   : > { %2378 = vmatprep.subr.mxu0 %v3345_v7  ;;  %2408 = vmatprep.subr.mxu1 %v3239_v24 }
  0x9e   : > { %2379 = vmatpush3.msra.mxu0 %v3345_v7  ;;  %2409 = vmatpush3.msra.mxu1 %v3239_v24 }
  0x9f   : > { %2380 = vmatprep.subr.mxu0 %v3366_v32  ;;  %2410 = vmatprep.subr.mxu1 %v3245_v26 }
  0xa0   : > { %2381 = vmatpush3.msra.mxu0 %v3366_v32  ;;  %2411 = vmatpush3.msra.mxu1 %v3245_v26 }
  0xa1   : > { %2382 = vmatprep.subr.mxu0 %v3389_v49  ;;  %2412 = vmatprep.subr.mxu1 %v3274_v39 }
  0xa2   : > { %2315 = vmatprep.mubr.f32.mxu0 %v406_v18  ;;  %2383 = vmatpush3.msra.mxu0 %v3389_v49 }
  0xa3   : > { %2413 = vmatpush3.msra.mxu1 %v3274_v39  ;;  %2316 = vmatmul.mubr.f32.gmra.mxu0 %v416_v54  ;;  %v4023_v54 = vand.u32 4294901760, %v3502_v56 }
  0xa4   : > { %2384 = vmatprep.subr.mxu0 %v3405_v1  ;;  %2414 = vmatprep.subr.mxu1 %v3289_v45 }
  0xa5   : > { %2385 = vmatpush3.msra.mxu0 %v3405_v1  ;;  %2415 = vmatpush3.msra.mxu1 %v3289_v45 }
  0xa6   : > { %2386 = vmatprep.subr.mxu0 %v3419_v60  ;;  %2416 = vmatprep.subr.mxu1 %v3307_v52 }
  0xa7   : > { %2387 = vmatpush3.msra.mxu0 %v3419_v60  ;;  %2388 = vmatprep.mubr.f32.mxu0 %v3363_v31  ;;  %v276_v31 = vld [vmem:[%s3192_s25] sm:$0xff] }
  0xa8   : > { %2417 = vmatpush3.msra.mxu1 %v3307_v52  ;;  %2353 = vmatprep.mubr.f32.mxu1 %v3489_v57 }
  0xa9   : > { %2389 = vmatmul.mubr.f32.vlgmr.msra.gmra.mxu0 %v3373_v38  ;;  %2418 = vmatprep.subr.mxu1 %v3323_v58  ;;  %v277_v38 = vld [vmem:[%s3192_s25 + $0x8] sm:$0xff] }
  0xaa   : > { %2432 = vmatprep.subr.mxu0 %v3231_v21  ;;  %2354 = vmatmul.mubr.f32.gmra.mxu1 %v3493_v6 }
  0xab   : > { %2419 = vmatpush3.msra.mxu1 %v3323_v58  ;;  %2433 = vmatpush3.msra.mxu0 %v3231_v21 }
  0xac   : > { %2420 = vmatprep.subr.mxu1 %v3353_v13  ;;  %2434 = vmatprep.subr.mxu0 %v3234_v22 }
  0xad   : > { %2391 = vmatprep.mubr.f32.mxu0 %v3502_v56  ;;  %2421 = vmatpush3.msra.mxu1 %v3353_v13  ;;  %v1071_v56 = vmul.f32 %v276_v31, %v276_v31  ;;  %v4029_v31 = vld [vmem:[#allocation21_spill] sm:$0xff] }
  0xae   : > { %2435 = vmatpush3.msra.mxu0 %v3234_v22  ;;  %2422 = vmatprep.subr.mxu1 %v3370_v35 }
  0xaf   : > { %2392 = vmatmul.mubr.f32.gmra.mxu0 %v3507_v63  ;;  %2436 = vmatprep.subr.mxu0 %v3237_v23  ;;  %v3669_v63 = vand.u32 4294901760, %v1071_v56 }
  0xb0   : > { %2423 = vmatpush3.msra.mxu1 %v3370_v35  ;;  %2437 = vmatpush3.msra.mxu0 %v3237_v23 }
  0xb1   : > { %2424 = vmatprep.subr.mxu1 %v3386_v48  ;;  %2438 = vmatprep.subr.mxu0 %v3243_v25 }
  0xb2   : > { %2425 = vmatpush3.msra.mxu1 %v3386_v48  ;;  %2426 = vmatprep.mubr.f32.mxu1 %v4021_v43  ;;  %v4028_v43 = vld [vmem:[#allocation20_spill] sm:$0xff] }
  0xb3   : > { %2439 = vmatpush3.msra.mxu0 %v3243_v25  ;;  %2427 = vmatmul.mubr.f32.vlgmr.msra.gmra.mxu1 %v4022_v46 }
  0xb4   : > { %2440 = vmatprep.subr.mxu0 %v3248_v27  ;;  %2470 = vmatprep.subr.mxu1 %v3198_v3 }
  0xb5   : > { %2441 = vmatpush3.msra.mxu0 %v3248_v27  ;;  %2471 = vmatpush3.msra.mxu1 %v3198_v3 }
  0xb6   : > { %2442 = vmatprep.subr.mxu0 %v3265_v34  ;;  %2472 = vmatprep.subr.mxu1 %v3200_v4 }
  0xb7   : > { %2429 = vmatprep.mubr.f32.mxu1 %v4023_v54  ;;  %2443 = vmatpush3.msra.mxu0 %v3265_v34 }
  0xb8   : > { %2473 = vmatpush3.msra.mxu1 %v3200_v4  ;;  %2444 = vmatprep.subr.mxu0 %v3280_v41 }
  0xb9   : > { %2430 = vmatmul.mubr.f32.gmra.mxu1 %v414_v30  ;;  %2474 = vmatprep.subr.mxu1 %v3202_v5  ;;  %v4027_v30 = vld [vmem:[#allocation19_spill] sm:$0xff] }
  0xba   : > { %2445 = vmatpush3.msra.mxu0 %v3280_v41  ;;  %2475 = vmatpush3.msra.mxu1 %v3202_v5 }
  0xbb   : > { %2446 = vmatprep.subr.mxu0 %v3310_v53  ;;  %2476 = vmatprep.subr.mxu1 %v3204_v9 }
  0xbc   : > { %2447 = vmatpush3.msra.mxu0 %v3310_v53  ;;  %2477 = vmatpush3.msra.mxu1 %v3204_v9 }
  0xbd   : > { %2448 = vmatprep.subr.mxu0 %v3326_v59  ;;  %2478 = vmatprep.subr.mxu1 %v3206_v10 }
  0xbe   : > { %2449 = vmatpush3.msra.mxu0 %v3326_v59  ;;  %2479 = vmatpush3.msra.mxu1 %v3206_v10 }
  0xbf   : > { %2450 = vmatprep.subr.mxu0 %v3342_v2  ;;  %2480 = vmatprep.subr.mxu1 %v3208_v11 }
  0xc0   : > { %2451 = vmatpush3.msra.mxu0 %v3342_v2  ;;  %2481 = vmatpush3.msra.mxu1 %v3208_v11 }
  0xc1   : > { %2452 = vmatprep.subr.mxu0 %v3360_v28  ;;  %2482 = vmatprep.subr.mxu1 %v3217_v16 }
  0xc2   : > { %2453 = vmatpush3.msra.mxu0 %v3360_v28  ;;  %2483 = vmatpush3.msra.mxu1 %v3217_v16 }
  0xc3   : > { %2454 = vmatprep.subr.mxu0 %v3382_v47  ;;  %2484 = vmatprep.subr.mxu1 %v3239_v24 }
  0xc4   : > { %2455 = vmatpush3.msra.mxu0 %v3382_v47  ;;  %2485 = vmatpush3.msra.mxu1 %v3239_v24 }
  0xc5   : > { %2456 = vmatprep.subr.mxu0 %v3399_v62  ;;  %2486 = vmatprep.subr.mxu1 %v3245_v26 }
  0xc6   : > { %2457 = vmatpush3.msra.mxu0 %v3399_v62  ;;  %2487 = vmatpush3.msra.mxu1 %v3245_v26 }
  0xc7   : > { %2458 = vmatprep.subr.mxu0 %v3416_v12  ;;  %2488 = vmatprep.subr.mxu1 %v3274_v39 }
  0xc8   : > { %2459 = vmatpush3.msra.mxu0 %v3416_v12  ;;  %2489 = vmatpush3.msra.mxu1 %v3274_v39 }
  0xc9   : > { %2460 = vmatprep.subr.mxu0 %v3436_v51  ;;  %2490 = vmatprep.subr.mxu1 %v3289_v45 }
  0xca   : > { %2461 = vmatpush3.msra.mxu0 %v3436_v51  ;;  %2491 = vmatpush3.msra.mxu1 %v3289_v45 }
  0xcb   : > { %2462 = vmatprep.subr.mxu0 %v3447_v50  ;;  %2492 = vmatprep.subr.mxu1 %v3307_v52 }
  0xcc   : > { %2463 = vmatpush3.msra.mxu0 %v3447_v50  ;;  %2464 = vmatprep.mubr.f32.mxu0 %v3335_v0 }
  0xcd   : > { %2493 = vmatpush3.msra.mxu1 %v3307_v52  ;;  %2465 = vmatmul.mubr.f32.vlgmr.msra.gmra.mxu0 %v3347_v8 }
  0xce   : > { %2494 = vmatprep.subr.mxu1 %v3323_v58  ;;  %2508 = vmatprep.subr.mxu0 %v3198_v3 }
  0xcf   : > { %2495 = vmatpush3.msra.mxu1 %v3323_v58  ;;  %2509 = vmatpush3.msra.mxu0 %v3198_v3 }
  0xd0   : > { %2496 = vmatprep.subr.mxu1 %v3353_v13  ;;  %2510 = vmatprep.subr.mxu0 %v3200_v4 }
  0xd1   : > { %2467 = vmatprep.mubr.f32.mxu0 %v3489_v57  ;;  %2497 = vmatpush3.msra.mxu1 %v3353_v13 }
  0xd2   : > { %2511 = vmatpush3.msra.mxu0 %v3200_v4  ;;  %2498 = vmatprep.subr.mxu1 %v3370_v35 }
  0xd3   : > { %2468 = vmatmul.mubr.f32.gmra.mxu0 %v3493_v6  ;;  %2512 = vmatprep.subr.mxu0 %v3202_v5 }
  0xd4   : > { %2499 = vmatpush3.msra.mxu1 %v3370_v35  ;;  %2513 = vmatpush3.msra.mxu0 %v3202_v5 }
  0xd5   : > { %2500 = vmatprep.subr.mxu1 %v3386_v48  ;;  %2514 = vmatprep.subr.mxu0 %v3204_v9 }
  0xd6   : > { %2501 = vmatpush3.msra.mxu1 %v3386_v48  ;;  %2502 = vmatprep.mubr.f32.mxu1 %v3335_v0  ;;  %v1072_v0 = vmul.f32 %v277_v38, %v277_v38  ;;  %v4030_v38 = vld [vmem:[#allocation22_spill] sm:$0xff] }
  0xd7   : > { %2515 = vmatpush3.msra.mxu0 %v3204_v9  ;;  %2503 = vmatmul.mubr.f32.vlgmr.msra.gmra.mxu1 %v3347_v8  ;;  %v4024_v8 = vld [vmem:[#allocation14_spill] sm:$0xff] }
  0xd8   : > { %2516 = vmatprep.subr.mxu0 %v3206_v10  ;;  %2546 = vmatprep.subr.mxu1 %v3268_v36 }
  0xd9   : > { %2517 = vmatpush3.msra.mxu0 %v3206_v10  ;;  %2547 = vmatpush3.msra.mxu1 %v3268_v36  ;;  %v3673_v36 = vand.u32 4294901760, %v1072_v0 }
  0xda   : > { %2518 = vmatprep.subr.mxu0 %v3208_v11  ;;  %2548 = vmatprep.subr.mxu1 %v3270_v37 }
  0xdb   : > { %2505 = vmatprep.mubr.f32.mxu1 %v3489_v57  ;;  %2519 = vmatpush3.msra.mxu0 %v3208_v11  ;;  %v4025_v57 = vld [vmem:[#allocation16_spill] sm:$0xff]  ;;  %v3687_v18 = vsub.f32 %v1072_v0, %v3673_v36 }
  0xdc   : > { %2549 = vmatpush3.msra.mxu1 %v3270_v37  ;;  %2520 = vmatprep.subr.mxu0 %v3217_v16  ;;  %v4026_v37 = vld [vmem:[#allocation18_spill] sm:$0xff] }
  0xdd   : > { %2506 = vmatmul.mubr.f32.gmra.mxu1 %v3493_v6  ;;  %2550 = vmatprep.subr.mxu1 %v4024_v8  ;;  %v3682_v6 = vsub.f32 %v1071_v56, %v3669_v63  ;;  %v1168_v54 = vand.u32 4294901760, %v3687_v18 }
  0xde   : > { %2521 = vmatpush3.msra.mxu0 %v3217_v16  ;;  %2551 = vmatpush3.msra.mxu1 %v4024_v8  ;;  %v4031_v8 = vld [vmem:[#allocation23_spill] sm:$0xff] }
  0xdf   : > { %2522 = vmatprep.subr.mxu0 %v3239_v24  ;;  %2552 = vmatprep.subr.mxu1 %v4025_v57  ;;  %v1158_v46 = vand.u32 4294901760, %v3682_v6  ;;  %v1169_v0 = vsub.f32 %v3687_v18, %v1168_v54 }
  0xe0   : > { %2523 = vmatpush3.msra.mxu0 %v3239_v24  ;;  %2553 = vmatpush3.msra.mxu1 %v4025_v57  ;;  %v4032_v57 = vld [vmem:[#allocation24_spill] sm:$0xff] }
  0xe1   : > { %2524 = vmatprep.subr.mxu0 %v3245_v26  ;;  %2554 = vmatprep.subr.mxu1 %v4026_v37  ;;  %v1159_v56 = vsub.f32 %v3682_v6, %v1158_v46 }
  0xe2   : > { %2525 = vmatpush3.msra.mxu0 %v3245_v26  ;;  %2555 = vmatpush3.msra.mxu1 %v4026_v37 }
  0xe3   : > { %2526 = vmatprep.subr.mxu0 %v3274_v39  ;;  %2556 = vmatprep.subr.mxu1 %v4027_v30  ;;  %v1160_v37 = vand.u32 4294901760, %v1159_v56 }
  0xe4   : > { %2527 = vmatpush3.msra.mxu0 %v3274_v39  ;;  %2557 = vmatpush3.msra.mxu1 %v4027_v30  ;;  %v1170_v30 = vand.u32 4294901760, %v1169_v0 }
  0xe5   : > { %2528 = vmatprep.subr.mxu0 %v3289_v45  ;;  %2558 = vmatprep.subr.mxu1 %v4028_v43 }
  0xe6   : > { %2529 = vmatpush3.msra.mxu0 %v3289_v45  ;;  %2559 = vmatpush3.msra.mxu1 %v4028_v43  ;;  %v4033_v43 = vld [vmem:[#allocation25_spill] sm:$0xff] }
  0xe7   : > { %2530 = vmatprep.subr.mxu0 %v3307_v52  ;;  %2560 = vmatprep.subr.mxu1 %v4029_v31 }
  0xe8   : > { %2531 = vmatpush3.msra.mxu0 %v3307_v52  ;;  %2561 = vmatpush3.msra.mxu1 %v4029_v31  ;;  %v278_v31 = vld [vmem:[%s3192_s25 + $0x10] sm:$0xff] }
  0xe9   : > { %2532 = vmatprep.subr.mxu0 %v3323_v58  ;;  %2562 = vmatprep.subr.mxu1 %v4030_v38  ;;  %v1073_v56 = vmul.f32 %v278_v31, %v278_v31 }
  0xea   : > { %2533 = vmatpush3.msra.mxu0 %v3323_v58  ;;  %2563 = vmatpush3.msra.mxu1 %v4030_v38  ;;  %v279_v38 = vld [vmem:[%s3192_s25 + $0x18] sm:$0xff] }
  0xeb   : > { %2534 = vmatprep.subr.mxu0 %v3353_v13  ;;  %2564 = vmatprep.subr.mxu1 %v4031_v8 }
  0xec   : > { %2535 = vmatpush3.msra.mxu0 %v3353_v13  ;;  %2565 = vmatpush3.msra.mxu1 %v4031_v8 }
  0xed   : > { %2536 = vmatprep.subr.mxu0 %v3370_v35  ;;  %2566 = vmatprep.subr.mxu1 %v4032_v57 }
  0xee   : > { %2537 = vmatpush3.msra.mxu0 %v3370_v35  ;;  %2567 = vmatpush3.msra.mxu1 %v4032_v57 }
  0xef   : > { %2538 = vmatprep.subr.mxu0 %v3386_v48  ;;  %2568 = vmatprep.subr.mxu1 %v4033_v43 }
  0xf0   : > { %2539 = vmatpush3.msra.mxu0 %v3386_v48  ;;  %2569 = vmatpush3.msra.mxu1 %v4033_v43 }
  0xf1   : > { %2540 = vmatprep.mubr.f32.mxu0 %v1160_v37  ;;  %2570 = vmatprep.subr.mxu1 %v3451_v44 }
  0xf2   : > { %2584 = vmatprep.subr.mxu0 %v3212_v14  ;;  %2541 = vmatmul.mubr.f32.vlgmr.msra.gmra.mxu0 %v1170_v30 }
  0xf3   : > { %2571 = vmatpush3.msra.mxu1 %v3451_v44  ;;  %2585 = vmatpush3.msra.mxu0 %v3212_v14  ;;  %v1074_v14 = vmul.f32 %v279_v38, %v279_v38 }
  0xf4   : > { %2572 = vmatprep.subr.mxu1 %v3461_v55  ;;  %2586 = vmatprep.subr.mxu0 %v3215_v15 }
  0xf5   : > { %2573 = vmatpush3.msra.mxu1 %v3461_v55  ;;  %2587 = vmatpush3.msra.mxu0 %v3215_v15  ;;  %v3745_v15 = vand.u32 4294901760, %v1073_v56  ;;  %v4035_v55 = vld [vmem:[#allocation15_spill] sm:$0xff] }
  0xf6   : > { %2574 = vmatprep.subr.mxu1 %v3467_v40  ;;  %2588 = vmatprep.subr.mxu0 %v3220_v17 }
  0xf7   : > { %2575 = vmatpush3.msra.mxu1 %v3467_v40  ;;  %2589 = vmatpush3.msra.mxu0 %v3220_v17  ;;  %v3749_v17 = vand.u32 4294901760, %v1074_v14 }
  0xf8   : > { %2576 = vmatprep.subr.mxu1 %v3474_v42  ;;  %2590 = vmatprep.subr.mxu0 %v3224_v19 }
  0xf9   : > { %2577 = vmatpush3.msra.mxu1 %v3474_v42  ;;  %2578 = vmatprep.mubr.f32.mxu1 %v3669_v63  ;;  %v3763_v44 = vsub.f32 %v1074_v14, %v3749_v17 }
  0xfa   : > { %2591 = vmatpush3.msra.mxu0 %v3224_v19  ;;  %2579 = vmatmul.mubr.f32.vlgmr.msra.gmra.mxu1 %v3673_v36  ;;  %v3758_v19 = vsub.f32 %v1073_v56, %v3745_v15 }
  0xfb   : > { %2592 = vmatprep.subr.mxu0 %v3227_v20  ;;  %2622 = vmatprep.subr.mxu1 %v3198_v3  ;;  %v1188_v40 = vand.u32 4294901760, %v3763_v44 }
  0xfc   : > { %2593 = vmatpush3.msra.mxu0 %v3227_v20  ;;  %2623 = vmatpush3.msra.mxu1 %v3198_v3  ;;  %v4034_v20 = vld [vmem:[#allocation13_spill] sm:$0xff] }
  0xfd   : > { %2594 = vmatprep.subr.mxu0 %v3251_v29  ;;  %2624 = vmatprep.subr.mxu1 %v3200_v4  ;;  %v1189_v0 = vsub.f32 %v3763_v44, %v1188_v40 }
  0xfe   : > { %2595 = vmatpush3.msra.mxu0 %v3251_v29  ;;  %2625 = vmatpush3.msra.mxu1 %v3200_v4  ;;  %v1178_v29 = vand.u32 4294901760, %v3758_v19 }
  0xff   : > { %2596 = vmatprep.subr.mxu0 %v3261_v33  ;;  %2626 = vmatprep.subr.mxu1 %v3202_v5  ;;  %v1190_v57 = vand.u32 4294901760, %v1189_v0 }
 0x100   : > { %2597 = vmatpush3.msra.mxu0 %v3261_v33  ;;  %2627 = vmatpush3.msra.mxu1 %v3202_v5  ;;  %v4036_v33 = vld [vmem:[#allocation17_spill] sm:$0xff]  ;;  %v1179_v42 = vsub.f32 %v3758_v19, %v1178_v29 }
 0x101   : > { %2598 = vmatprep.subr.mxu0 %v4034_v20  ;;  %2628 = vmatprep.subr.mxu1 %v3204_v9 }
 0x102   : > { %2599 = vmatpush3.msra.mxu0 %v4034_v20  ;;  %2629 = vmatpush3.msra.mxu1 %v3204_v9  ;;  %v1180_v8 = vand.u32 4294901760, %v1179_v42 }
 0x103   : > { %2600 = vmatprep.subr.mxu0 %v4035_v55  ;;  %2630 = vmatprep.subr.mxu1 %v3206_v10 }
 0x104   : > { %2601 = vmatpush3.msra.mxu0 %v4035_v55  ;;  %2631 = vmatpush3.msra.mxu1 %v3206_v10 }
 0x105   : > { %2602 = vmatprep.subr.mxu0 %v4036_v33  ;;  %2632 = vmatprep.subr.mxu1 %v3208_v11 }
 0x106   : > { %2603 = vmatpush3.msra.mxu0 %v4036_v33  ;;  %2633 = vmatpush3.msra.mxu1 %v3208_v11 }
 0x107   : > { %2604 = vmatprep.subr.mxu0 %v3329_v61  ;;  %2634 = vmatprep.subr.mxu1 %v3217_v16 }
 0x108   : > { %2605 = vmatpush3.msra.mxu0 %v3329_v61  ;;  %2635 = vmatpush3.msra.mxu1 %v3217_v16 }
 0x109   : > { %2606 = vmatprep.subr.mxu0 %v3345_v7  ;;  %2636 = vmatprep.subr.mxu1 %v3239_v24 }
 0x10a   : > { %2607 = vmatpush3.msra.mxu0 %v3345_v7  ;;  %2637 = vmatpush3.msra.mxu1 %v3239_v24 }
 0x10b   : > { %2608 = vmatprep.subr.mxu0 %v3366_v32  ;;  %2638 = vmatprep.subr.mxu1 %v3245_v26 }
 0x10c   : > { %2609 = vmatpush3.msra.mxu0 %v3366_v32  ;;  %2639 = vmatpush3.msra.mxu1 %v3245_v26 }
 0x10d   : > { %2610 = vmatprep.subr.mxu0 %v3389_v49  ;;  %2640 = vmatprep.subr.mxu1 %v3274_v39 }
 0x10e   : > { %2543 = vmatprep.mubr.f32.mxu0 %v1180_v8  ;;  %2611 = vmatpush3.msra.mxu0 %v3389_v49 }
 0x10f   : > { %2641 = vmatpush3.msra.mxu1 %v3274_v39  ;;  %2544 = vmatmul.mubr.f32.gmra.mxu0 %v1190_v57 }
 0x110   : > { %2612 = vmatprep.subr.mxu0 %v3405_v1  ;;  %2642 = vmatprep.subr.mxu1 %v3289_v45 }
 0x111   : > { %2613 = vmatpush3.msra.mxu0 %v3405_v1  ;;  %2643 = vmatpush3.msra.mxu1 %v3289_v45 }
 0x112   : > { %2614 = vmatprep.subr.mxu0 %v3419_v60  ;;  %2644 = vmatprep.subr.mxu1 %v3307_v52 }
 0x113   : > { %2615 = vmatpush3.msra.mxu0 %v3419_v60  ;;  %2616 = vmatprep.mubr.f32.mxu0 %v3682_v6 }
 0x114   : > { %2645 = vmatpush3.msra.mxu1 %v3307_v52  ;;  %2581 = vmatprep.mubr.f32.mxu1 %v3745_v15 }
 0x115   : > { %2617 = vmatmul.mubr.f32.vlgmr.msra.gmra.mxu0 %v3687_v18  ;;  %2646 = vmatprep.subr.mxu1 %v3323_v58 }
 0x116   : > { %2660 = vmatprep.subr.mxu0 %v3231_v21  ;;  %2582 = vmatmul.mubr.f32.gmra.mxu1 %v3749_v17 }
 0x117   : > { %2647 = vmatpush3.msra.mxu1 %v3323_v58  ;;  %2661 = vmatpush3.msra.mxu0 %v3231_v21 }
 0x118   : > { %2648 = vmatprep.subr.mxu1 %v3353_v13  ;;  %2662 = vmatprep.subr.mxu0 %v3234_v22 }
 0x119   : > { %2619 = vmatprep.mubr.f32.mxu0 %v3758_v19  ;;  %2649 = vmatpush3.msra.mxu1 %v3353_v13 }
 0x11a   : > { %2663 = vmatpush3.msra.mxu0 %v3234_v22  ;;  %2650 = vmatprep.subr.mxu1 %v3370_v35 }
 0x11b   : > { %2620 = vmatmul.mubr.f32.gmra.mxu0 %v3763_v44  ;;  %2664 = vmatprep.subr.mxu0 %v3237_v23 }
 0x11c   : > { %2651 = vmatpush3.msra.mxu1 %v3370_v35  ;;  %2665 = vmatpush3.msra.mxu0 %v3237_v23 }
 0x11d   : > { %2652 = vmatprep.subr.mxu1 %v3386_v48  ;;  %2666 = vmatprep.subr.mxu0 %v3243_v25 }
 0x11e   : > { %2653 = vmatpush3.msra.mxu1 %v3386_v48  ;;  %2654 = vmatprep.mubr.f32.mxu1 %v1158_v46 }
 0x11f   : > { %2667 = vmatpush3.msra.mxu0 %v3243_v25  ;;  %2655 = vmatmul.mubr.f32.vlgmr.msra.gmra.mxu1 %v1168_v54 }
 0x120   : > { %2668 = vmatprep.subr.mxu0 %v3248_v27  ;;  %2698 = vmatprep.subr.mxu1 %v3198_v3 }
 0x121   : > { %2669 = vmatpush3.msra.mxu0 %v3248_v27  ;;  %2699 = vmatpush3.msra.mxu1 %v3198_v3 }
 0x122   : > { %2670 = vmatprep.subr.mxu0 %v3265_v34  ;;  %2700 = vmatprep.subr.mxu1 %v3200_v4 }
 0x123   : > { %2657 = vmatprep.mubr.f32.mxu1 %v1178_v29  ;;  %2671 = vmatpush3.msra.mxu0 %v3265_v34 }
 0x124   : > { %2701 = vmatpush3.msra.mxu1 %v3200_v4  ;;  %2672 = vmatprep.subr.mxu0 %v3280_v41 }
 0x125   : > { %2658 = vmatmul.mubr.f32.gmra.mxu1 %v1188_v40  ;;  %2702 = vmatprep.subr.mxu1 %v3202_v5 }
 0x126   : > { %2673 = vmatpush3.msra.mxu0 %v3280_v41  ;;  %2703 = vmatpush3.msra.mxu1 %v3202_v5 }
 0x127   : > { %2674 = vmatprep.subr.mxu0 %v3310_v53  ;;  %2704 = vmatprep.subr.mxu1 %v3204_v9 }
 0x128   : > { %2675 = vmatpush3.msra.mxu0 %v3310_v53  ;;  %2705 = vmatpush3.msra.mxu1 %v3204_v9 }
 0x129   : > { %2676 = vmatprep.subr.mxu0 %v3326_v59  ;;  %2706 = vmatprep.subr.mxu1 %v3206_v10 }
 0x12a   : > { %2677 = vmatpush3.msra.mxu0 %v3326_v59  ;;  %2707 = vmatpush3.msra.mxu1 %v3206_v10 }
 0x12b   : > { %2678 = vmatprep.subr.mxu0 %v3342_v2  ;;  %2708 = vmatprep.subr.mxu1 %v3208_v11 }
 0x12c   : > { %2679 = vmatpush3.msra.mxu0 %v3342_v2  ;;  %2709 = vmatpush3.msra.mxu1 %v3208_v11 }
 0x12d   : > { %2680 = vmatprep.subr.mxu0 %v3360_v28  ;;  %2710 = vmatprep.subr.mxu1 %v3217_v16 }
 0x12e   : > { %2681 = vmatpush3.msra.mxu0 %v3360_v28  ;;  %2711 = vmatpush3.msra.mxu1 %v3217_v16 }
 0x12f   : > { %2682 = vmatprep.subr.mxu0 %v3382_v47  ;;  %2712 = vmatprep.subr.mxu1 %v3239_v24 }
 0x130   : > { %2683 = vmatpush3.msra.mxu0 %v3382_v47  ;;  %2713 = vmatpush3.msra.mxu1 %v3239_v24 }
 0x131   : > { %2684 = vmatprep.subr.mxu0 %v3399_v62  ;;  %2714 = vmatprep.subr.mxu1 %v3245_v26 }
 0x132   : > { %2685 = vmatpush3.msra.mxu0 %v3399_v62  ;;  %2715 = vmatpush3.msra.mxu1 %v3245_v26 }
 0x133   : > { %2686 = vmatprep.subr.mxu0 %v3416_v12  ;;  %2716 = vmatprep.subr.mxu1 %v3274_v39 }
 0x134   : > { %2687 = vmatpush3.msra.mxu0 %v3416_v12  ;;  %2717 = vmatpush3.msra.mxu1 %v3274_v39 }
 0x135   : > { %2688 = vmatprep.subr.mxu0 %v3436_v51  ;;  %2718 = vmatprep.subr.mxu1 %v3289_v45 }
 0x136   : > { %2689 = vmatpush3.msra.mxu0 %v3436_v51  ;;  %2719 = vmatpush3.msra.mxu1 %v3289_v45 }
 0x137   : > { %2690 = vmatprep.subr.mxu0 %v3447_v50  ;;  %2720 = vmatprep.subr.mxu1 %v3307_v52 }
 0x138   : > { %2691 = vmatpush3.msra.mxu0 %v3447_v50  ;;  %2692 = vmatprep.mubr.f32.mxu0 %v3669_v63 }
 0x139   : > { %2721 = vmatpush3.msra.mxu1 %v3307_v52  ;;  %2693 = vmatmul.mubr.f32.vlgmr.msra.gmra.mxu0 %v3673_v36 }
 0x13a   : > { %2722 = vmatprep.subr.mxu1 %v3323_v58  ;;  %2695 = vmatprep.mubr.f32.mxu0 %v3745_v15 }
 0x13b   : > { %2723 = vmatpush3.msra.mxu1 %v3323_v58  ;;  %2730 = vmatprep.mubr.f32.mxu1 %v3669_v63 }
 0x13c   : > { %2724 = vmatprep.subr.mxu1 %v3353_v13 }
 0x13d   : > { %2725 = vmatpush3.msra.mxu1 %v3353_v13  ;;  %2696 = vmatmul.mubr.f32.gmra.mxu0 %v3749_v17 }
 0x13e   : > { %2726 = vmatprep.subr.mxu1 %v3370_v35 }
 0x13f   : > { %2727 = vmatpush3.msra.mxu1 %v3370_v35 }
 0x140   : > { %2728 = vmatprep.subr.mxu1 %v3386_v48 }
 0x141   : > { %2729 = vmatpush3.msra.mxu1 %v3386_v48 }
 0x142   : > { %2731 = vmatmul.mubr.f32.vlgmr.msra.gmra.mxu1 %v3673_v36 }
 0x143   : > { %2733 = vmatprep.mubr.f32.mxu1 %v3745_v15 }
 0x146   : > { %2734 = vmatmul.mubr.f32.gmra.mxu1 %v3749_v17  ;;  %v2314_v3 = vpop.f32.mrf.mxu0 }
 0x148   : > { %v388_v4 = vpop.f32.mrf.mxu0 }
 0x14e   : > { %v2352_v10 = vpop.f32.mrf.mxu1 }
 0x14f   : > { %v576_v60 = vadd.f32 %v2352_v10, %v2314_v3 }
 0x150   : > { %v569_v16 = vpop.f32.mrf.mxu1 }
 0x151   : > { %v570_v46 = vadd.f32 %v569_v16, %v388_v4 }
 0x163   : > { %v2317_v5 = vpop.f32.mrf.mxu0 }
 0x165   : > { %v408_v9 = vpop.f32.mrf.mxu0 }
 0x169   : > { %v2390_v11 = vpop.f32.mrf.mxu0 }
 0x16a   : > { %v2355_v22 = vpop.f32.mrf.mxu1  ;;  %v699_v36 = vadd.f32 %v2390_v11, %v576_v60  ;;  %v1885_v60 = vstv %s280_s13 }
 0x16b   : > { %v691_v21 = vpop.f32.mrf.mxu0  ;;  %v588_v18 = vadd.f32 %v2355_v22, %v2317_v5 }
 0x16c   : > { %v581_v24 = vpop.f32.mrf.mxu1  ;;  %v692_v43 = vadd.f32 %v691_v21, %v570_v46 }
 0x16d   : > { %v582_v15 = vadd.f32 %v581_v24, %v408_v9 }
 0x16f   : > { %v2393_v23 = vpop.f32.mrf.mxu0 }
 0x170   : > { %v713_v17 = vadd.f32 %v2393_v23, %v588_v18 }
 0x171   : > { %v705_v26 = vpop.f32.mrf.mxu0 }
 0x172   : > { %v706_v4 = vadd.f32 %v705_v26, %v582_v15 }
 0x173   : > { %v2428_v25 = vpop.f32.mrf.mxu1 }
 0x174   : > { %v810_v54 = vadd.f32 %v2428_v25, %v699_v36 }
 0x175   : > { %v801_v34 = vpop.f32.mrf.mxu1 }
 0x176   : > { %v802_v44 = vadd.f32 %v801_v34, %v692_v43 }
 0x179   : > { %v2431_v41 = vpop.f32.mrf.mxu1 }
 0x17a   : > { %v826_v55 = vadd.f32 %v2431_v41, %v713_v17  ;;  %v2818_v17 = vld [vmem:[%s3295_s10 + $0x8] sm:$0xff] }
 0x17b   : > { %v817_v51 = vpop.f32.mrf.mxu1 }
 0x17c   : > { %v818_v23 = vadd.f32 %v817_v51, %v706_v4 }
 0x18d   : > { %v2466_v27 = vpop.f32.mrf.mxu0 }
 0x18e   : > { %v951_v31 = vadd.f32 %v2466_v27, %v810_v54 }
 0x18f   : > { %v944_v39 = vpop.f32.mrf.mxu0 }
 0x190   : > { %v945_v0 = vadd.f32 %v944_v39, %v802_v44 }
 0x193   : > { %v2469_v45 = vpop.f32.mrf.mxu0 }
 0x194   : > { %v963_v5 = vadd.f32 %v2469_v45, %v826_v55 }
 0x195   : > { %v956_v53 = vpop.f32.mrf.mxu0 }
 0x196   : > { %v957_v39 = vadd.f32 %v956_v53, %v818_v23 }
 0x197   : > { %v2504_v52 = vpop.f32.mrf.mxu1 }
 0x198   : > { %v1056_v20 = vadd.f32 %v2504_v52, %v951_v31 }
 0x199   : > { %v1049_v59 = vpop.f32.mrf.mxu1 }
 0x19a   : > { %v1874_v16 = vmax.f32 %v1056_v20, 1e-24  ;;  %v1050_v21 = vadd.f32 %v1049_v59, %v945_v0  ;;  %v2819_v0 = vld [vmem:[%s3295_s10] sm:$0xff] }
 0x19c   : > { %v1873_v26 = vmax.f32 %v1050_v21, 1e-24 }
 0x19d   : > { %v2507_v2 = vpop.f32.mrf.mxu1 }
 0x19e   : > { %v1068_v34 = vadd.f32 %v2507_v2, %v963_v5 }
 0x19f   : > { %v1061_v12 = vpop.f32.mrf.mxu1 }
 0x1b2   : > { %v2542_v58 = vpop.f32.mrf.mxu0 }
 0x1b4   : > { %v1162_v61 = vpop.f32.mrf.mxu0 }
 0x1ba   : > { %v2580_v28 = vpop.f32.mrf.mxu1 }
 0x1bb   : > { %v1350_v37 = vadd.f32 %v2580_v28, %v2542_v58 }
 0x1bc   : > { %v1343_v35 = vpop.f32.mrf.mxu1 }
 0x1bd   : > { %v1344_v19 = vadd.f32 %v1343_v35, %v1162_v61 }
 0x1cf   : > { %v2545_v7 = vpop.f32.mrf.mxu0 }
 0x1d1   : > { %v1182_v13 = vpop.f32.mrf.mxu0 }
 0x1d5   : > { %v2618_v32 = vpop.f32.mrf.mxu0 }
 0x1d6   : > { %v2583_v47 = vpop.f32.mrf.mxu1  ;;  %v1473_v38 = vadd.f32 %v2618_v32, %v1350_v37  ;;  %v1876_v32 = vmax.f32 %v1068_v34, 1e-24 }
 0x1d7   : > { %v1465_v48 = vpop.f32.mrf.mxu0  ;;  %v1362_v56 = vadd.f32 %v2583_v47, %v2545_v7 }
 0x1d8   : > { %v1355_v49 = vpop.f32.mrf.mxu1  ;;  %v1466_v40 = vadd.f32 %v1465_v48, %v1344_v19 }
 0x1d9   : > { %v1356_v33 = vadd.f32 %v1355_v49, %v1182_v13  ;;  %v1062_v13 = vadd.f32 %v1061_v12, %v957_v39 }
 0x1db   : > { %v2621_v50 = vpop.f32.mrf.mxu0  ;;  %v1875_v35 = vmax.f32 %v1062_v13, 1e-24 }
 0x1dc   : > { %v1487_v8 = vadd.f32 %v2621_v50, %v1362_v56 }
 0x1dd   : > { %v1479_v1 = vpop.f32.mrf.mxu0 }
 0x1de   : > { %v1480_v24 = vadd.f32 %v1479_v1, %v1356_v33 }
 0x1df   : > { %v2656_v62 = vpop.f32.mrf.mxu1 }
 0x1e0   : > { %v1584_v29 = vadd.f32 %v2656_v62, %v1473_v38 }
 0x1e1   : > { %v1575_v63 = vpop.f32.mrf.mxu1 }
 0x1e2   : > { %v1576_v10 = vadd.f32 %v1575_v63, %v1466_v40 }
 0x1e5   : > { %v2659_v30 = vpop.f32.mrf.mxu1 }
 0x1e6   : > { %v1600_v9 = vadd.f32 %v2659_v30, %v1487_v8 }
 0x1e7   : > { %v1591_v42 = vpop.f32.mrf.mxu1 }
 0x1e8   : > { %v1592_v58 = vadd.f32 %v1591_v42, %v1480_v24 }
 0x1f9   : > { %v2694_v6 = vpop.f32.mrf.mxu0 }
 0x1fa   : > { %v1725_v57 = vadd.f32 %v2694_v6, %v1584_v29 }
 0x1fb   : > { %v1718_v14 = vpop.f32.mrf.mxu0 }
 0x1fc   : > { %v1719_v25 = vadd.f32 %v1718_v14, %v1576_v10  ;;  %v2821_v10 = vld [vmem:[%s3295_s10 + $0x10] sm:$0xff] }
 0x1fd   : > { %v2697_v3 = vpop.f32.mrf.mxu0 }
 0x1fe   : > { %v1737_v41 = vadd.f32 %v2697_v3, %v1600_v9  ;;  %v2820_v3 = vld [vmem:[%s3295_s10 + $0x18] sm:$0xff] }
 0x1ff   : > { %v1730_v52 = vpop.f32.mrf.mxu0 }
 0x200   : > { %v1731_v28 = vadd.f32 %v1730_v52, %v1592_v58 }
 0x202   : > { %v2732_v11 = vpop.f32.mrf.mxu1 }
 0x203   : > { %v1830_v22 = vadd.f32 %v2732_v11, %v1725_v57 }
 0x204   : > { %v1823_v27 = vpop.f32.mrf.mxu1 }
 0x205   : > { %2802 = vrsqrt.f32 %v1830_v22  ;;  %v1824_v61 = vadd.f32 %v1823_v27, %v1719_v25  ;;  %vm1854_vm0 = vcmp.eq.f32.partialorder %v1830_v22, inf  ;;  %v1857_v48 = vand.u32 2147483648, %v1830_v22 }
 0x206   : > { %v2735_v7 = vpop.f32.mrf.mxu1  ;;  %2804 = vrsqrt.f32 %v1874_v16  ;;  %vm1856_vm1 = vcmp.eq.f32.partialorder %v1830_v22, 0.0 }
 0x207   : > { %v1842_v45 = vadd.f32 %v2735_v7, %v1737_v41  ;;  %2806 = vrsqrt.f32 %v1824_v61  ;;  %vm1847_vm2 = vcmp.eq.f32.partialorder %v1824_v61, inf  ;;  %v1850_v36 = vand.u32 2147483648, %v1824_v61 }
 0x208   : > { %v1835_v59 = vpop.f32.mrf.mxu1  ;;  %vm1849_vm3 = vcmp.eq.f32.partialorder %v1824_v61, 0.0 }
 0x209   : > { %2808 = vrsqrt.f32 %v1842_v45  ;;  %v1836_v51 = vadd.f32 %v1835_v59, %v1731_v28  ;;  %vm1868_vm4 = vcmp.eq.f32.partialorder %v1842_v45, inf  ;;  %v1871_v54 = vand.u32 2147483648, %v1842_v45 }
 0x20a   : > { %2810 = vrsqrt.f32 %v1873_v26  ;;  %vm1870_vm5 = vcmp.eq.f32.partialorder %v1842_v45, 0.0 }
 0x20b   : > { %2812 = vrsqrt.f32 %v1836_v51  ;;  %vm1861_vm6 = vcmp.eq.f32.partialorder %v1836_v51, inf  ;;  %v1864_v20 = vand.u32 2147483648, %v1836_v51  ;;  %vm1863_vm7 = vcmp.eq.f32.partialorder %v1836_v51, 0.0 }
 0x20c   : > { %2814 = vrsqrt.f32 %v1876_v32 }
 0x20d   : > { %2816 = vrsqrt.f32 %v1875_v35 }
 0x212   : > { %v2803_v53 = vpop.eup %2802 }
 0x213   : > { %v1853_v2 = vmul.f32 %v2803_v53, %v1830_v22  ;;  %v2805_v47 = vpop.eup %2804 }
 0x214   : > { %v2807_v49 = vpop.eup %2806 }
 0x215   : > { %v1855_v50 = vsel %vm1854_vm0, %v1830_v22, %v1853_v2  ;;  %v1846_v1 = vmul.f32 %v2807_v49, %v1824_v61 }
 0x216   : > { %v2809_v12 = vpop.eup %2808  ;;  %v1858_v62 = vsel %vm1856_vm1, %v1857_v48, %v1855_v50 }
 0x217   : > { %v1882_v63 = vmul.f32 %v2805_v47, %v1858_v62  ;;  %v1867_v6 = vmul.f32 %v2809_v12, %v1842_v45  ;;  %v2811_v18 = vpop.eup %2810  ;;  %v1848_v46 = vsel %vm1847_vm2, %v1824_v61, %v1846_v1 }
 0x218   : > { %v2813_v37 = vpop.eup %2812  ;;  %v1851_v43 = vsel %vm1849_vm3, %v1850_v36, %v1848_v46 }
 0x219   : > { %v1887_v30 = vmul.f32 %v1885_v60, %v1882_v63  ;;  %v1869_v31 = vsel %vm1868_vm4, %v1842_v45, %v1867_v6  ;;  %v2815_v38 = vpop.eup %2814  ;;  %v1881_v56 = vmul.f32 %v2811_v18, %v1851_v43  ;;  %v1860_v15 = vmul.f32 %v2813_v37, %v1836_v51 }
 0x21a   : > { %v1872_v14 = vsel %vm1870_vm5, %v1871_v54, %v1869_v31  ;;  %v2817_v40 = vpop.eup %2816 }
 0x21b   : > { %v1891_v19 = vmul.f32 %v2818_v17, %v1887_v30  ;;  %v1884_v44 = vmul.f32 %v2815_v38, %v1872_v14  ;;  %v1886_v29 = vmul.f32 %v1885_v60, %v1881_v56  ;;  %v1862_v55 = vsel %vm1861_vm6, %v1836_v51, %v1860_v15 }
 0x21c   : > { %v1865_v42 = vsel %vm1863_vm7, %v1864_v20, %v1862_v55 }
 0x21d   : > { %v1889_v33 = vmul.f32 %v1885_v60, %v1884_v44  ;;  %1895 = vst [vmem:[%s268_s15 + $0x8] sm:$0xff] %v1891_v19  ;;  %v1890_v8 = vmul.f32 %v2819_v0, %v1886_v29  ;;  %v1883_v57 = vmul.f32 %v2817_v40, %v1865_v42 }
 0x21f   : > { %v1893_v4 = vmul.f32 %v2820_v3, %v1889_v33  ;;  %v1888_v5 = vmul.f32 %v1885_v60, %v1883_v57  ;;  %1894 = vst [vmem:[%s268_s15] sm:$0xff] %v1890_v8 }
 0x221   : > { %1897 = vst [vmem:[%s268_s15 + $0x18] sm:$0xff] %v1893_v4  ;;  %v1892_v11 = vmul.f32 %v2821_v10, %v1888_v5 }
 0x223   : > { %1896 = vst [vmem:[%s268_s15 + $0x10] sm:$0xff] %v1892_v11 }
 0x224   : > { %2917 = shalt.err (!%p2914_p2)
}
 0x225   : > { %s2918_s8 = scalar_lea.hbm %s3913_s11, 512  ;;  %s2922_s21 = scalar_lea.hbm %s3965_s4, 1024 }
 0x226   : > { %p2919_p7 = scmp.ne.s32.totalorder %s3913_s11, %s2918_s8  ;;  %p2923_p6 = scmp.lt.s32.totalorder %s3913_s11, %s3965_s4 }
 0x227   : > { %p2924_p13 = scmp.lt.s32.totalorder %s2922_s21, %s2918_s8 }
 0x228   : > { %p2920_p11 = pnand %p2919_p7, %p4037_p10 }
 0x229   : > { %p2925_p0 = por %p2924_p13, %p2923_p6 }
 0x22a   : > { %p2921_p4 = pneg %p2920_p11 }
 0x22c   : > { %p2926_p8 = pnand %p2925_p0, %p2921_p4 }
 0x22e   : > { %2929 = shalt.err (!%p2926_p8)
}
 0x22f   : > { %s2980_s10 = smov 128   ;;  %s2981_s13 = smov 8  }
 0x230   : > { %2744 = dma.vmem_to_hbm [thread:$0]  (%p4037_p10), %s3915_s28, 512, %s3913_s11, %s3920_s5, %s2980_s10, %s2980_s10, %s2981_s13  }
 0x231 PF: > { %s1927_s15 = sand.u32 1, %s2960_s17   ;;  %p4038_p9 = scmp.ne.s32.totalorder %s3999_s30, 0 }
 0x232   : > { %p4039_p3 = scmp.ge.s32.totalorder %s2972_s20, 2  ;;  %s1928_s22 = scalar_lea.sflag [#allocation5], %s1927_s15 }
 0x234   : > { %p2758_p1 = pnand %p4039_p3, %p4038_p9 }
 0x236   : > { %p2759_p5 = pneg %p2758_p1 }
 0x238   : > { %2955 = dma.done.wait (%p2759_p5), %s1928_s22, 512  }
 0x239   : > { %2957 = vsyncadd (%p2759_p5), %s1928_s22, 4294966784  ;;  %p19_p12 = scmp.ge.s32.totalorder %s3031_s0, 4   ;;  %s4040_s17 = smov %s2964_s18 }
 0x23a   : > { %s4041_s18 = smov %s2968_s19  ;;  %s4042_s19 = smov %s3040_s23 }
 0x23b   : > { %s4043_s20 = smov %s3031_s0  ;;  %21 = sbr.rel (!%p19_p12) target bundleno = 8 (0x8), region = 97 }
 0x240   :  { %1933 = vsyncpa [#allocation4], 1 }
 0x241   :  { %1935 = vsyncpa [#allocation4 + $0x1], 1 }
 0x242   :  { %1936 = vsyncpa [#allocation7], 1 }
 0x243   :  { %1938 = vsyncpa [#allocation7 + $0x1], 1 }
 0x244   :  { %1939 = vsyncpa [#allocation5], 1 }
 0x245   :  { %1941 = vsyncpa [#allocation5 + $0x1], 1 }

</bundles_post_ra>
